<compile_context>
chip_gen: v7x
topology: tpu7x:2x2x1
jax: 0.10.0
libtpu: 0.0.40
codegen_flags: <defaults>
</compile_context>

<pallas_src>
import functools

import jax
import jax.numpy as jnp
import numpy as np
from jax import lax
from jax.experimental import pallas as pl
from jax.experimental.pallas import tpu as pltpu

KSIZE = 9     # kernel_size=9, stride=1, no padding, bias=True
LANE = 128    # TPU lane width


def _conv_matmul_kernel(p_ref, w_ref, b_ref, o_ref):
    """One M-tile of:  o = relu(p @ w + b).

    p: [TM, K]    patches tile (bf16 or f32)
    w: [K,  Cp]   weight matrix, Cout zero-padded to Cp=128k (resident)
    b: [1,  Cp]   bias, f32 (resident)
    o: [TM, Cp]   lane-dense output tile
    """
    acc = jnp.dot(p_ref[...], w_ref[...], preferred_element_type=jnp.float32)
    acc = acc + b_ref[...]                       # broadcast bias over rows (VPU)
    o_ref[...] = jnp.maximum(acc, 0.0).astype(o_ref.dtype)


def _round_up(x, m):
    return (x + m - 1) // m * m


def _device_kind():
    try:
        return jax.devices()[0].device_kind.lower()
    except Exception:
        return ""


def _default_use_bf16():
    # bf16 MXU path pays off on v6e/v7x; keep f32 on v5e (no bf16 VPU there).
    kind = _device_kind()
    return ("v6" in kind) or ("v7" in kind)


def _pick_tile_m(M, K, cout_pad, in_bytes, out_bytes, budget_bytes=24 << 20):
    """Largest M-tile (multiple of 8) whose double-buffered tiles fit VMEM."""
    w_bytes = 2 * K * cout_pad * in_bytes            # resident weights (conservative x2)
    per_row = 2 * (K * in_bytes + cout_pad * out_bytes)  # double-buffered in + out rows
    tm = max(8, (budget_bytes - w_bytes) // per_row)
    tm_cap = 512 if "v5" in _device_kind() else 1024     # v5e: lower HBM BW, 1 vst slot
    tm = min(int(tm), tm_cap, _round_up(M, 8))
    return max(8, (tm // 8) * 8)


def conv_layer_forward(x, weight, bias, *, use_bf16=None, nchw_output=True,
                       interpret=False):
    """Equivalent of ConvLayer.forward (Conv2d(k=9, s=1, bias=True) + ReLU).

    x:      [N, Cin, H, W]     (NCHW, like the PyTorch module)
    weight: [Cout, Cin, 9, 9]  (PyTorch Conv2d layout)
    bias:   [Cout]
    Returns [N, Cout, HO, WO] (NCHW) by default; pass nchw_output=False to get
    the lane-friendlier [N, HO, WO, Cout] and skip a full-tensor transpose.
    """
    N, Cin, H, W = x.shape
    Cout = weight.shape[0]
    HO, WO = H - KSIZE + 1, W - KSIZE + 1
    M = N * HO * WO
    K = Cin * KSIZE * KSIZE
    Cp = _round_up(Cout, LANE)                 # lane-dense output columns

    if use_bf16 is None:
        use_bf16 = _default_use_bf16()
    in_dtype = jnp.bfloat16 if use_bf16 else x.dtype
    out_dtype = x.dtype
    in_bytes = 2 if use_bf16 else x.dtype.itemsize
    out_bytes = x.dtype.itemsize

    # --- Patch extraction: one fused XLA op, NHWC output.  Output channel
    # index = cin*81 + kh*9 + kw, matching weight.reshape(Cout, Cin*81). ---
    xs = x.astype(in_dtype)
    patches = lax.conv_general_dilated_patches(
        xs, filter_shape=(KSIZE, KSIZE), window_strides=(1, 1), padding="VALID",
        dimension_numbers=("NCHW", "OIHW", "NHWC"))            # [N, HO, WO, K]
    patches = patches.reshape(M, K)
    # TODO(synk): build patch tiles inside the kernel from a VMEM-resident input
    # row band (manual DMA) to avoid materializing the im2col matrix in HBM.

    # Weight / bias with Cout zero-padded to Cp for unmasked 128-lane stores.
    w_mat = jnp.zeros((K, Cp), dtype=in_dtype)
    w_mat = w_mat.at[:, :Cout].set(weight.reshape(Cout, K).T.astype(in_dtype))
    b_mat = jnp.zeros((1, Cp), dtype=jnp.float32)
    b_mat = b_mat.at[:, :Cout].set(bias.astype(jnp.float32).reshape(1, Cout))

    tm = _pick_tile_m(M, K, Cp, in_bytes, out_bytes)
    grid = (pl.cdiv(M, tm),)

    out_flat = pl.pallas_call(
        _conv_matmul_kernel,
        out_shape=jax.ShapeDtypeStruct((M, Cp), out_dtype),
        grid_spec=pltpu.PrefetchScalarGridSpec(
            num_scalar_prefetch=0,
            grid=grid,
            in_specs=[
                pl.BlockSpec((tm, K), lambda i: (i, 0)),   # streamed M-tiles
                pl.BlockSpec((K, Cp), lambda i: (0, 0)),   # resident weights
                pl.BlockSpec((1, Cp), lambda i: (0, 0)),   # resident bias
            ],
            out_specs=pl.BlockSpec((tm, Cp), lambda i: (i, 0)),
        ),
        compiler_params=pltpu.CompilerParams(
            dimension_semantics=("parallel",),   # v7x: both TCs split the M grid
            vmem_limit_bytes=32 * 1024 * 1024,
        ),
        interpret=interpret,
    )(patches, w_mat, b_mat)

    out = out_flat[:, :Cout].reshape(N, HO, WO, Cout)   # drop lane padding
    if nchw_output:
        out = jnp.transpose(out, (0, 3, 1, 2))          # match nn.Conv2d layout
    return out


if __name__ == "__main__":
    key = jax.random.PRNGKey(0)
    k_x, k_w, k_b = jax.random.split(key, 3)

    # Small shapes consistent with the module (batch=2, in=4, out=32, 16x16).
    N, Cin, Cout, H, W = 2, 4, 32, 16, 16

    x = jax.random.normal(k_x, (N, Cin, H, W), dtype=jnp.float32)
    # Deterministic synthetic parameters (not a checkpoint load).
    fan_in = Cin * KSIZE * KSIZE
    weight = jax.random.normal(k_w, (Cout, Cin, KSIZE, KSIZE),
                               dtype=jnp.float32) * (1.0 / np.sqrt(fan_in))
    bias = jax.random.normal(k_b, (Cout,), dtype=jnp.float32) * 0.1

    use_bf16 = _default_use_bf16()
    fwd = jax.jit(functools.partial(conv_layer_forward, use_bf16=use_bf16))
    out = jax.block_until_ready(fwd(x, weight, bias))

    # Reference: XLA conv with the same semantics as nn.Conv2d + ReLU (f32).
    ref = lax.conv_general_dilated(
        x, weight, window_strides=(1, 1), padding="VALID",
        dimension_numbers=("NCHW", "OIHW", "NCHW"),
    ) + bias.reshape(1, Cout, 1, 1)
    ref = jnp.maximum(ref, 0.0)

    tol = dict(rtol=2e-2, atol=2e-2) if use_bf16 else dict(rtol=1e-5, atol=1e-5)
    np.testing.assert_allclose(np.asarray(out), np.asarray(ref), **tol)
    assert out.shape == (N, Cout, H - KSIZE + 1, W - KSIZE + 1)
    print("KERNEL_OK")
</pallas_src>

<mosaic_0001>
module attributes {stable_mosaic.version = 11 : i64} {
  func.func @_conv_matmul_kernel(%arg0: i32, %arg1: memref<128x324xf32, #tpu.memory_space<vmem>>, %arg2: memref<324x128xf32, #tpu.memory_space<vmem>>, %arg3: memref<1x128xf32, #tpu.memory_space<vmem>>, %arg4: memref<128x128xf32, #tpu.memory_space<vmem>>) attributes {dimension_semantics = [#tpu.dimension_semantics<parallel>], iteration_bounds = array<i64: 1>, scalar_prefetch = 0 : i64, scratch_operands = 0 : i64, tpu.core_type = #tpu.core_type<tc>, window_params = [{transform_indices = @transform_0, window_bounds = array<i64: 128, 324>}, {pipeline_mode = #tpu.pipeline_mode<synchronous>, transform_indices = @transform_1, window_bounds = array<i64: 324, 128>}, {pipeline_mode = #tpu.pipeline_mode<synchronous>, transform_indices = @transform_2, window_bounds = array<i64: 1, 128>}, {transform_indices = @transform_3, window_bounds = array<i64: 128, 128>}]} {
    %c0 = arith.constant 0 : index
    %c0_0 = arith.constant 0 : index
    %0 = vector.load %arg1[%c0, %c0_0] : memref<128x324xf32, #tpu.memory_space<vmem>>, vector<128x324xf32>
    %c0_1 = arith.constant 0 : index
    %c0_2 = arith.constant 0 : index
    %1 = vector.load %arg2[%c0_1, %c0_2] : memref<324x128xf32, #tpu.memory_space<vmem>>, vector<324x128xf32>
    %cst = arith.constant dense<0.000000e+00> : vector<128x128xf32>
    %2 = tpu.matmul %0, %1, %cst {dimension_numbers = #tpu.dot_dimension_numbers<[1], [0], [0], [1], [0, 0, 1, 1], [], []>} : vector<128x324xf32>, vector<324x128xf32>, vector<128x128xf32> -> vector<128x128xf32>
    %c0_3 = arith.constant 0 : index
    %c0_4 = arith.constant 0 : index
    %3 = vector.load %arg3[%c0_3, %c0_4] : memref<1x128xf32, #tpu.memory_space<vmem>>, vector<1x128xf32>
    %4 = vector.broadcast %3 : vector<1x128xf32> to vector<128x128xf32>
    %5 = arith.addf %2, %4 : vector<128x128xf32>
    %cst_5 = arith.constant 0.000000e+00 : f32
    %6 = vector.broadcast %cst_5 : f32 to vector<128x128xf32>
    %7 = arith.maximumf %5, %6 : vector<128x128xf32>
    %c0_6 = arith.constant 0 : index
    %c0_7 = arith.constant 0 : index
    %8 = vector.load %arg4[%c0_6, %c0_7] : memref<128x128xf32, #tpu.memory_space<vmem>>, vector<128x128xf32>
    tpu.vector_store %arg4[%c0_6, %c0_7], %7 {strides = array<i32>} : memref<128x128xf32, #tpu.memory_space<vmem>>, vector<128x128xf32>,
    return
  }
  func.func @transform_0(%arg0: i32) -> (i32, i32) {
    %c0_i32 = arith.constant 0 : i32
    %c0_i32_0 = arith.constant 0 : i32
    return %arg0, %c0_i32 : i32, i32
  }
  func.func @transform_1(%arg0: i32) -> (i32, i32) {
    %c0_i32 = arith.constant 0 : i32
    %c0_i32_0 = arith.constant 0 : i32
    %c0_i32_1 = arith.constant 0 : i32
    return %c0_i32, %c0_i32_0 : i32, i32
  }
  func.func @transform_2(%arg0: i32) -> (i32, i32) {
    %c0_i32 = arith.constant 0 : i32
    %c0_i32_0 = arith.constant 0 : i32
    %c0_i32_1 = arith.constant 0 : i32
    return %c0_i32, %c0_i32_0 : i32, i32
  }
  func.func @transform_3(%arg0: i32) -> (i32, i32) {
    %c0_i32 = arith.constant 0 : i32
    %c0_i32_0 = arith.constant 0 : i32
    return %arg0, %c0_i32 : i32, i32
  }
}

</mosaic_0001>

<bundles_post_ra>
// kernel: conv_layer_forward.1
= control target key start
LH: loop header
LB: loop body
LE: loop exit
PB: predicated region body
PF: predicated region fallthrough
CT: control target
= control target key end

     0   :  { %vm111_vm0 = vcmask 556032   ;;  %vm160_vm1 = vcmask 1043456   ;;  %s1099_s0 = inlined_call_operand.vmem [shape: f32[128,324], index: 0, kind: input, shape index: {}]   ;;  %s1100_s1 = inlined_call_operand.vmem [shape: f32[324,128], index: 1, kind: input, shape index: {}]   ;;  %s1101_s2 = inlined_call_operand.vmem [shape: f32[1,128], index: 2, kind: input, shape index: {}]   ;;  %s1102_s3 = inlined_call_operand.hbm [shape: f32[128,128], index: 3, kind: output, shape index: {}]  }
   0x1   :  { %v79_v0 = vld [vmem:[%s1100_s1 + $0x80] sm:$0xff]  ;;  %v80_v1 = vld [vmem:[%s1100_s1 + $0x88] sm:$0xff]  ;;  %v81_v5 = vld [vmem:[%s1100_s1 + $0x90] sm:$0xff] }
   0x2   :  { %v63_v2 = vld [vmem:[%s1100_s1] sm:$0xff]  ;;  %v667_v3 = vpack.c.bf16 %v80_v1, %v79_v0  ;;  %v64_v4 = vld [vmem:[%s1100_s1 + $0x8] sm:$0xff]  ;;  %v82_v6 = vld [vmem:[%s1100_s1 + $0x98] sm:$0xff] }
   0x3   :  { %v669_v7 = vpack.c.bf16 %v64_v4, %v63_v2  ;;  %v671_v8 = vpack.c.bf16 %v82_v6, %v81_v5  ;;  %v65_v9 = vld [vmem:[%s1100_s1 + $0x10] sm:$0xff]  ;;  %v66_v10 = vld [vmem:[%s1100_s1 + $0x18] sm:$0xff]  ;;  %v83_v11 = vld [vmem:[%s1100_s1 + $0xa0] sm:$0xff] }
   0x4   :  { %668 = vmatprep.subr.bf16.mxu0 %v667_v3  ;;  %v84_v12 = vld [vmem:[%s1100_s1 + $0xa8] sm:$0xff]  ;;  %v673_v13 = vpack.c.bf16 %v66_v10, %v65_v9  ;;  %v67_v15 = vld [vmem:[%s1100_s1 + $0x20] sm:$0xff]  ;;  %v85_v17 = vld [vmem:[%s1100_s1 + $0xb0] sm:$0xff] }
   0x5   :  { %670 = vmatpush3.bf16.msra.mxu0 %v669_v7  ;;  %v675_v14 = vpack.c.bf16 %v84_v12, %v83_v11  ;;  %v68_v16 = vld [vmem:[%s1100_s1 + $0x28] sm:$0xff]  ;;  %v86_v18 = vld [vmem:[%s1100_s1 + $0xb8] sm:$0xff]  ;;  %v95_v19 = vld [vmem:[%s1100_s1 + $0x100] sm:$0xff] }
   0x6   :  { %672 = vmatprep.subr.bf16.mxu0 %v671_v8  ;;  %v96_v20 = vld [vmem:[%s1100_s1 + $0x108] sm:$0xff]  ;;  %v677_v21 = vpack.c.bf16 %v68_v16, %v67_v15  ;;  %v97_v23 = vld [vmem:[%s1100_s1 + $0x110] sm:$0xff]  ;;  %v679_v24 = vpack.c.bf16 %v86_v18, %v85_v17  ;;  %v70_v26 = vld [vmem:[%s1100_s1 + $0x38] sm:$0xff] }
   0x7   :  { %v699_v22 = vpack.c.bf16 %v96_v20, %v95_v19  ;;  %v69_v25 = vld [vmem:[%s1100_s1 + $0x30] sm:$0xff]  ;;  %v98_v27 = vld [vmem:[%s1100_s1 + $0x118] sm:$0xff]  ;;  %v87_v28 = vld [vmem:[%s1100_s1 + $0xc0] sm:$0xff] }
   0x8   :  { %v88_v29 = vld [vmem:[%s1100_s1 + $0xc8] sm:$0xff]  ;;  %v703_v30 = vpack.c.bf16 %v98_v27, %v97_v23  ;;  %v99_v31 = vld [vmem:[%s1100_s1 + $0x120] sm:$0xff]  ;;  %v681_v33 = vpack.c.bf16 %v70_v26, %v69_v25  ;;  %v101_v38 = vld [vmem:[%s1100_s1 + $0x130] sm:$0xff] }
   0x9   :  { %674 = vmatpush3.bf16.msra.mxu0 %v673_v13  ;;  %700 = vmatprep.subr.bf16.mxu1 %v699_v22  ;;  %v100_v32 = vld [vmem:[%s1100_s1 + $0x128] sm:$0xff]  ;;  %v71_v34 = vld [vmem:[%s1100_s1 + $0x40] sm:$0xff]  ;;  %v683_v37 = vpack.c.bf16 %v88_v29, %v87_v28  ;;  %v102_v39 = vld [vmem:[%s1100_s1 + $0x138] sm:$0xff] }
   0xa   :  { %676 = vmatprep.subr.bf16.mxu0 %v675_v14  ;;  %702 = vmatpush3.bf16.msra.mxu1 %v699_v22  ;;  %v72_v35 = vld [vmem:[%s1100_s1 + $0x48] sm:$0xff]  ;;  %v707_v36 = vpack.c.bf16 %v100_v32, %v99_v31  ;;  %v89_v41 = vld [vmem:[%s1100_s1 + $0xd0] sm:$0xff]  ;;  %v90_v42 = vld [vmem:[%s1100_s1 + $0xd8] sm:$0xff]  ;;  %v711_v45 = vpack.c.bf16 %v102_v39, %v101_v38 }
   0xb   :  { %704 = vmatprep.subr.bf16.mxu1 %v703_v30  ;;  %v16_v40 = vld [vmem:[%s1099_s0 + $0x8] sm:$0xff]  ;;  %v17_v43 = vld [vmem:[%s1099_s0 + $0x10] sm:$0xff]  ;;  %v685_v44 = vpack.c.bf16 %v72_v35, %v71_v34  ;;  %v687_v46 = vpack.c.bf16 %v90_v42, %v89_v41  ;;  %v74_v48 = vld [vmem:[%s1100_s1 + $0x58] sm:$0xff] }
   0xc   :  { %228 = vmatprep.mubr.f32.mxu0 %v16_v40  ;;  %643 = vmatprep.mubr.msk.f32.mxu1 %vm111_vm0, %v17_v43  ;;  %v73_v47 = vld [vmem:[%s1100_s1 + $0x50] sm:$0xff]  ;;  %v91_v49 = vld [vmem:[%s1100_s1 + $0xe0] sm:$0xff]  ;;  %v92_v50 = vld [vmem:[%s1100_s1 + $0xe8] sm:$0xff] }
   0xd   :  { %678 = vmatpush3.bf16.msra.mxu0 %v677_v21  ;;  %v689_v51 = vpack.c.bf16 %v74_v48, %v73_v47  ;;  %v691_v52 = vpack.c.bf16 %v92_v50, %v91_v49  ;;  %v75_v53 = vld [vmem:[%s1100_s1 + $0x60] sm:$0xff]  ;;  %v76_v54 = vld [vmem:[%s1100_s1 + $0x68] sm:$0xff]  ;;  %v93_v56 = vld [vmem:[%s1100_s1 + $0xf0] sm:$0xff] }
   0xe   :  { %680 = vmatprep.subr.bf16.mxu0 %v679_v24  ;;  %706 = vmatpush3.bf16.msra.mxu1 %v703_v30  ;;  %v103_v55 = vld [vmem:[%s1100_s1 + $0x140] sm:$0xf]  ;;  %v94_v57 = vld [vmem:[%s1100_s1 + $0xf8] sm:$0xff]  ;;  %v693_v58 = vpack.c.bf16 %v76_v54, %v75_v53  ;;  %v77_v60 = vld [vmem:[%s1100_s1 + $0x70] sm:$0xff] }
   0xf   :  { %708 = vmatprep.subr.bf16.mxu1 %v707_v36  ;;  %v695_v59 = vpack.c.bf16 %v94_v57, %v93_v56  ;;  %v78_v61 = vld [vmem:[%s1100_s1 + $0x78] sm:$0xff]  ;;  %v20_v62 = vld [vmem:[%s1099_s0 + $0x28] sm:$0xff]  ;;  %v23_v63 = vld [vmem:[%s1099_s0 + $0x40] sm:$0xff] }
  0x10   :  { %v697_v0 = vpack.c.bf16 %v78_v61, %v77_v60  ;;  %v26_v1 = vld [vmem:[%s1099_s0 + $0x58] sm:$0xff] }
  0x11   :  { %682 = vmatpush3.bf16.msra.mxu0 %v681_v33 }
  0x12   :  { %684 = vmatprep.subr.bf16.mxu0 %v683_v37  ;;  %710 = vmatpush3.bf16.msra.mxu1 %v707_v36 }
  0x13   :  { %712 = vmatprep.subr.bf16.mxu1 %v711_v45 }
  0x15   :  { %686 = vmatpush3.bf16.msra.mxu0 %v685_v44 }
  0x16   :  { %688 = vmatprep.subr.bf16.mxu0 %v687_v46  ;;  %714 = vmatpush3.bf16.msra.mxu1 %v711_v45 }
  0x17   :  { %641 = vmatprep.subr.msk.mxu1 %vm160_vm1, %v103_v55 }
  0x19   :  { %690 = vmatpush3.bf16.msra.mxu0 %v689_v51 }
  0x1a   :  { %692 = vmatprep.subr.bf16.mxu0 %v691_v52  ;;  %642 = vmatpush3.msk.msra.mxu1 %vm160_vm1, %v103_v55 }
  0x1b   :  { %644 = vmatmul.mubr.msk.f32.vlgmr.msra.gmra.mrb[0].mxu1 %vm111_vm0, %v20_v62 }
  0x1c   :  { %646 = vmatprep.mubr.msk.f32.mxu1 %vm111_vm0, %v23_v63 }
  0x1d   :  { %694 = vmatpush3.bf16.msra.mxu0 %v693_v58 }
  0x1e   :  { %696 = vmatprep.subr.bf16.mxu0 %v695_v59 }
  0x1f   :  { %8 = vsyncpa [#allocation3], 0  ;;  %v29_v2 = vld [vmem:[%s1099_s0 + $0x70] sm:$0xff]  ;;  %v15_v3 = vld [vmem:[%s1099_s0] sm:$0xff]  ;;  %647 = vmatmul.mubr.msk.f32.gmra.mrb[2].mxu1 %vm111_vm0, %v26_v1 }
  0x20   :  { %v19_v4 = vld [vmem:[%s1099_s0 + $0x20] sm:$0xff]  ;;  %649 = vmatprep.mubr.msk.f32.mxu1 %vm111_vm0, %v29_v2  ;;  %v32_v5 = vld [vmem:[%s1099_s0 + $0x88] sm:$0xff]  ;;  %v18_v7 = vld [vmem:[%s1099_s0 + $0x18] sm:$0xff] }
  0x21   :  { %698 = vmatpush3.bf16.msra.mxu0 %v697_v0  ;;  %v35_v6 = vld [vmem:[%s1099_s0 + $0xa0] sm:$0xff]  ;;  %v22_v8 = vld [vmem:[%s1099_s0 + $0x38] sm:$0xff]  ;;  %v41_v10 = vld [vmem:[%s1099_s0 + $0xd0] sm:$0xff] }
  0x22   :  { %v38_v9 = vld [vmem:[%s1099_s0 + $0xb8] sm:$0xff]  ;;  %v21_v11 = vld [vmem:[%s1099_s0 + $0x30] sm:$0xff]  ;;  %v44_v13 = vld [vmem:[%s1099_s0 + $0xe8] sm:$0xff] }
  0x23   :  { %650 = vmatmul.mubr.msk.f32.gmra.mrb[4].mxu1 %vm111_vm0, %v32_v5  ;;  %v25_v12 = vld [vmem:[%s1099_s0 + $0x50] sm:$0xff]  ;;  %v47_v14 = vld [vmem:[%s1099_s0 + $0x100] sm:$0xff]  ;;  %v24_v15 = vld [vmem:[%s1099_s0 + $0x48] sm:$0xff] }
  0x24   :  { %229 = vmatmul.mubr.f32.vlgmr.msra.gmra.mrb[0].mxu0 %v15_v3  ;;  %652 = vmatprep.mubr.msk.f32.mxu1 %vm111_vm0, %v35_v6  ;;  %v28_v16 = vld [vmem:[%s1099_s0 + $0x68] sm:$0xff]  ;;  %v50_v17 = vld [vmem:[%s1099_s0 + $0x118] sm:$0xff]  ;;  %v53_v18 = vld [vmem:[%s1099_s0 + $0x130] sm:$0xff] }
  0x25   :  { %233 = vmatprep.mubr.f32.mxu0 %v19_v4  ;;  %v27_v19 = vld [vmem:[%s1099_s0 + $0x60] sm:$0xff]  ;;  %v56_v21 = vld [vmem:[%s1099_s0 + $0x148] sm:$0xff]  ;;  %v30_v23 = vld [vmem:[%s1099_s0 + $0x78] sm:$0xff] }
  0x26   :  { %v31_v20 = vld [vmem:[%s1099_s0 + $0x80] sm:$0xff]  ;;  %v34_v24 = vld [vmem:[%s1099_s0 + $0x98] sm:$0xff]  ;;  %v33_v26 = vld [vmem:[%s1099_s0 + $0x90] sm:$0xff] }
  0x27   :  { %653 = vmatmul.mubr.msk.f32.gmra.mrb[6].mxu1 %vm111_vm0, %v38_v9  ;;  %v59_v22 = vld [vmem:[%s1099_s0 + $0x160] sm:$0xff]  ;;  %v62_v25 = vld [vmem:[%s1099_s0 + $0x178] sm:$0xff]  ;;  %v37_v27 = vld [vmem:[%s1099_s0 + $0xb0] sm:$0xff] }
  0x28   :  { %234 = vmatmul.mubr.f32.gmra.mrb[2].mxu0 %v18_v7  ;;  %655 = vmatprep.mubr.msk.f32.mxu1 %vm111_vm0, %v41_v10  ;;  %v36_v28 = vld [vmem:[%s1099_s0 + $0xa8] sm:$0xff]  ;;  %v39_v30 = vld [vmem:[%s1099_s0 + $0xc0] sm:$0xff]  ;;  %v42_v32 = vld [vmem:[%s1099_s0 + $0xd8] sm:$0xff] }
  0x29   :  { %238 = vmatprep.mubr.f32.mxu0 %v22_v8  ;;  %v40_v29 = vld [vmem:[%s1099_s0 + $0xc8] sm:$0xff]  ;;  %v43_v31 = vld [vmem:[%s1099_s0 + $0xe0] sm:$0xff]  ;;  %v46_v33 = vld [vmem:[%s1099_s0 + $0xf8] sm:$0xff] }
  0x2a   :  { %v45_v34 = vld [vmem:[%s1099_s0 + $0xf0] sm:$0xff]  ;;  %v48_v36 = vld [vmem:[%s1099_s0 + $0x108] sm:$0xff]  ;;  %v51_v38 = vld [vmem:[%s1099_s0 + $0x120] sm:$0xff] }
  0x2b   :  { %656 = vmatmul.mubr.msk.f32.gmra.mrb[8].mxu1 %vm111_vm0, %v44_v13  ;;  %v49_v35 = vld [vmem:[%s1099_s0 + $0x110] sm:$0xff]  ;;  %v52_v37 = vld [vmem:[%s1099_s0 + $0x128] sm:$0xff]  ;;  %v55_v39 = vld [vmem:[%s1099_s0 + $0x140] sm:$0xff] }
  0x2c   :  { %239 = vmatmul.mubr.f32.gmra.mrb[4].mxu0 %v21_v11  ;;  %658 = vmatprep.mubr.msk.f32.mxu1 %vm111_vm0, %v47_v14  ;;  %v54_v40 = vld [vmem:[%s1099_s0 + $0x138] sm:$0xff]  ;;  %v57_v42 = vld [vmem:[%s1099_s0 + $0x150] sm:$0xff]  ;;  %v60_v44 = vld [vmem:[%s1099_s0 + $0x168] sm:$0xff] }
  0x2d   :  { %243 = vmatprep.mubr.f32.mxu0 %v25_v12  ;;  %v58_v41 = vld [vmem:[%s1099_s0 + $0x158] sm:$0xff]  ;;  %v61_v43 = vld [vmem:[%s1099_s0 + $0x170] sm:$0xff]  ;;  %v1051_v51 = vld [vmem:[%s1101_s2] ss:$0 sm:$0xff]  ;;  %s742_s0 = smov [#allocation2]  }
  0x2e   :  { %s491_s2 = sshll.u32 %s742_s0, 4  ;;  %s492_s2 = int_to_ptr.vmem [resolvable:$true] %s491_s2 }
  0x2f   :  { %659 = vmatmul.mubr.msk.f32.gmra.mrb[10].mxu1 %vm111_vm0, %v50_v17  ;;  %s718_s26 = scalar_lea.vmem %s492_s2, 2048  ;;  %p723_p1 = scmp.lt.s32.totalorder %s492_s2, %s492_s2 }
  0x30   :  { %244 = vmatmul.mubr.f32.gmra.mrb[6].mxu0 %v24_v15  ;;  %661 = vmatprep.mubr.msk.f32.mxu1 %vm111_vm0, %v53_v18  ;;  %p719_p0 = scmp.ne.s32.totalorder %s492_s2, %s718_s26  ;;  %p724_p2 = scmp.lt.s32.totalorder %s718_s26, %s718_s26 }
  0x31   :  { %248 = vmatprep.mubr.f32.mxu0 %v28_v16 }
  0x32   :  { %p725_p3 = por %p724_p2, %p723_p1 }
  0x33   :  { %662 = vmatmul.mubr.msk.f32.gmra.mrb[12].mxu1 %vm111_vm0, %v56_v21 }
  0x34   :  { %249 = vmatmul.mubr.f32.gmra.mrb[8].mxu0 %v27_v19  ;;  %664 = vmatprep.mubr.msk.f32.mxu1 %vm111_vm0, %v59_v22  ;;  %p726_p4 = pnand %p725_p3, %p719_p0 }
  0x35   :  { %253 = vmatprep.mubr.f32.mxu0 %v31_v20 }
  0x37   :  { %665 = vmatmul.mubr.msk.f32.gmra.mrb[14].mxu1 %vm111_vm0, %v62_v25 }
  0x38   :  { %254 = vmatmul.mubr.f32.gmra.mrb[10].mxu0 %v30_v23 }
  0x39   :  { %258 = vmatprep.mubr.f32.mxu0 %v34_v24 }
  0x3c   :  { %259 = vmatmul.mubr.f32.gmra.mrb[12].mxu0 %v33_v26 }
  0x3d   :  { %263 = vmatprep.mubr.f32.mxu0 %v37_v27 }
  0x40   :  { %264 = vmatmul.mubr.f32.gmra.mrb[14].mxu0 %v36_v28 }
  0x41   :  { %268 = vmatprep.mubr.f32.mxu0 %v40_v29 }
  0x44   :  { %269 = vmatmul.mubr.f32.gmra.mrb[16].mxu0 %v39_v30 }
  0x45   :  { %273 = vmatprep.mubr.f32.mxu0 %v43_v31 }
  0x48   :  { %274 = vmatmul.mubr.f32.gmra.mrb[18].mxu0 %v42_v32 }
  0x49   :  { %278 = vmatprep.mubr.f32.mxu0 %v46_v33 }
  0x4c   :  { %279 = vmatmul.mubr.f32.gmra.mrb[20].mxu0 %v45_v34 }
  0x4d   :  { %283 = vmatprep.mubr.f32.mxu0 %v49_v35 }
  0x50   :  { %284 = vmatmul.mubr.f32.gmra.mrb[22].mxu0 %v48_v36 }
  0x51   :  { %288 = vmatprep.mubr.f32.mxu0 %v52_v37 }
  0x54   :  { %289 = vmatmul.mubr.f32.gmra.mrb[24].mxu0 %v51_v38 }
  0x55   :  { %293 = vmatprep.mubr.f32.mxu0 %v55_v39 }
  0x58   :  { %294 = vmatmul.mubr.f32.gmra.mrb[26].mxu0 %v54_v40 }
  0x59   :  { %298 = vmatprep.mubr.f32.mxu0 %v58_v41 }
  0x5c   :  { %299 = vmatmul.mubr.f32.gmra.mrb[28].mxu0 %v57_v42 }
  0x5d   :  { %303 = vmatprep.mubr.f32.mxu0 %v61_v43 }
  0x60   :  { %304 = vmatmul.mubr.f32.gmra.mrb[30].mxu0 %v60_v44 }
  0xee   :  { %v645_v45 = vpop.f32.mrb[0].mxu1 }
  0xef   :  { %v375_v46 = vpop.f32.mrb[1].mxu1 }
  0xf2   :  { %v648_v47 = vpop.f32.mrb[2].mxu1 }
  0xf3   :  { %v385_v48 = vpop.f32.mrb[3].mxu1 }
  0xf6   :  { %v651_v52 = vpop.f32.mrb[4].mxu1 }
  0xf7   :  { %v552_v49 = vpop.f32.mrb[0].mxu0  ;;  %v395_v54 = vpop.f32.mrb[5].mxu1 }
  0xf8   :  { %v553_v50 = vpop.f32.mrb[1].mxu0 }
  0xf9   :  { %v554_v53 = vadd.f32 %v553_v50, %v552_v49 }
  0xfa   :  { %v654_v58 = vpop.f32.mrb[6].mxu1 }
  0xfb   :  { %v555_v55 = vpop.f32.mrb[2].mxu0  ;;  %v231_v56 = vadd.f32 %v554_v53, %v1051_v51  ;;  %v405_v61 = vpop.f32.mrb[7].mxu1 }
  0xfc   :  { %v556_v57 = vpop.f32.mrb[3].mxu0 }
  0xfd   :  { %v557_v59 = vadd.f32 %v556_v57, %v555_v55  ;;  %v376_v60 = vadd.f32 %v375_v46, %v231_v56 }
  0xfe   :  { %v1055_v2 = vpop.f32.mrb[8].mxu1 }
  0xff   :  { %v236_v62 = vadd.f32 %v557_v59, %v1051_v51  ;;  %v454_v63 = vmax.f32 %v376_v60, 0.0  ;;  %v558_v0 = vpop.f32.mrb[4].mxu0  ;;  %v415_v5 = vpop.f32.mrb[9].mxu1 }
 0x100   :  { %v559_v1 = vpop.f32.mrb[5].mxu0 }
 0x101   :  { %v381_v3 = vadd.f32 %v645_v45, %v236_v62  ;;  %470 = vst [vmem:[#allocation2] sm:$0xff] %v454_v63  ;;  %v560_v4 = vadd.f32 %v559_v1, %v558_v0 }
 0x102   :  { %v1058_v10 = vpop.f32.mrb[10].mxu1 }
 0x103   :  { %v455_v6 = vmax.f32 %v381_v3, 0.0  ;;  %v561_v7 = vpop.f32.mrb[6].mxu0  ;;  %v241_v8 = vadd.f32 %v560_v4, %v1051_v51  ;;  %v425_v13 = vpop.f32.mrb[11].mxu1 }
 0x104   :  { %v562_v9 = vpop.f32.mrb[7].mxu0 }
 0x105   :  { %471 = vst [vmem:[#allocation2 + $0x8] sm:$0xff] %v455_v6  ;;  %v563_v11 = vadd.f32 %v562_v9, %v561_v7  ;;  %v386_v12 = vadd.f32 %v385_v48, %v241_v8 }
 0x106   :  { %v1061_v18 = vpop.f32.mrb[12].mxu1 }
 0x107   :  { %v246_v14 = vadd.f32 %v563_v11, %v1051_v51  ;;  %v456_v15 = vmax.f32 %v386_v12, 0.0  ;;  %v564_v16 = vpop.f32.mrb[8].mxu0  ;;  %v1063_v21 = vpop.f32.mrb[13].mxu1 }
 0x108   :  { %v565_v17 = vpop.f32.mrb[9].mxu0 }
 0x109   :  { %v391_v19 = vadd.f32 %v648_v47, %v246_v14  ;;  %472 = vst [vmem:[#allocation2 + $0x10] sm:$0xff] %v456_v15  ;;  %v566_v20 = vadd.f32 %v565_v17, %v564_v16 }
 0x10a   :  { %v1066_v26 = vpop.f32.mrb[14].mxu1 }
 0x10b   :  { %v457_v22 = vmax.f32 %v391_v19, 0.0  ;;  %v567_v23 = vpop.f32.mrb[10].mxu0  ;;  %v251_v24 = vadd.f32 %v566_v20, %v1051_v51  ;;  %v1068_v29 = vpop.f32.mrb[15].mxu1 }
 0x10c   :  { %v568_v25 = vpop.f32.mrb[11].mxu0 }
 0x10d   :  { %473 = vst [vmem:[#allocation2 + $0x18] sm:$0xff] %v457_v22  ;;  %v569_v27 = vadd.f32 %v568_v25, %v567_v23  ;;  %v396_v28 = vadd.f32 %v395_v54, %v251_v24 }
 0x10f   :  { %v256_v30 = vadd.f32 %v569_v27, %v1051_v51  ;;  %v458_v31 = vmax.f32 %v396_v28, 0.0  ;;  %v570_v32 = vpop.f32.mrb[12].mxu0 }
 0x110   :  { %v571_v33 = vpop.f32.mrb[13].mxu0 }
 0x111   :  { %v401_v34 = vadd.f32 %v651_v52, %v256_v30  ;;  %474 = vst [vmem:[#allocation2 + $0x20] sm:$0xff] %v458_v31  ;;  %v572_v35 = vadd.f32 %v571_v33, %v570_v32 }
 0x113   :  { %v459_v36 = vmax.f32 %v401_v34, 0.0  ;;  %v573_v37 = vpop.f32.mrb[14].mxu0  ;;  %v261_v38 = vadd.f32 %v572_v35, %v1051_v51 }
 0x114   :  { %v574_v39 = vpop.f32.mrb[15].mxu0 }
 0x115   :  { %475 = vst [vmem:[#allocation2 + $0x28] sm:$0xff] %v459_v36  ;;  %v575_v40 = vadd.f32 %v574_v39, %v573_v37  ;;  %v406_v41 = vadd.f32 %v405_v61, %v261_v38 }
 0x117   :  { %v266_v42 = vadd.f32 %v575_v40, %v1051_v51  ;;  %v460_v43 = vmax.f32 %v406_v41, 0.0  ;;  %v576_v44 = vpop.f32.mrb[16].mxu0 }
 0x118   :  { %v577_v45 = vpop.f32.mrb[17].mxu0 }
 0x119   :  { %v411_v46 = vadd.f32 %v654_v58, %v266_v42  ;;  %476 = vst [vmem:[#allocation2 + $0x30] sm:$0xff] %v460_v43  ;;  %v578_v47 = vadd.f32 %v577_v45, %v576_v44 }
 0x11b   :  { %v461_v48 = vmax.f32 %v411_v46, 0.0  ;;  %v579_v49 = vpop.f32.mrb[18].mxu0  ;;  %v271_v50 = vadd.f32 %v578_v47, %v1051_v51 }
 0x11c   :  { %v580_v52 = vpop.f32.mrb[19].mxu0 }
 0x11d   :  { %477 = vst [vmem:[#allocation2 + $0x38] sm:$0xff] %v461_v48  ;;  %v581_v53 = vadd.f32 %v580_v52, %v579_v49  ;;  %v416_v54 = vadd.f32 %v415_v5, %v271_v50 }
 0x11f   :  { %v276_v55 = vadd.f32 %v581_v53, %v1051_v51  ;;  %v462_v56 = vmax.f32 %v416_v54, 0.0  ;;  %v582_v57 = vpop.f32.mrb[20].mxu0 }
 0x120   :  { %v583_v59 = vpop.f32.mrb[21].mxu0 }
 0x121   :  { %v421_v60 = vadd.f32 %v1055_v2, %v276_v55  ;;  %478 = vst [vmem:[#allocation2 + $0x40] sm:$0xff] %v462_v56  ;;  %v584_v61 = vadd.f32 %v583_v59, %v582_v57 }
 0x123   :  { %v463_v58 = vmax.f32 %v421_v60, 0.0  ;;  %v585_v62 = vpop.f32.mrb[22].mxu0  ;;  %v281_v63 = vadd.f32 %v584_v61, %v1051_v51 }
 0x124   :  { %v586_v0 = vpop.f32.mrb[23].mxu0 }
 0x125   :  { %479 = vst [vmem:[#allocation2 + $0x48] sm:$0xff] %v463_v58  ;;  %v587_v1 = vadd.f32 %v586_v0, %v585_v62  ;;  %v426_v3 = vadd.f32 %v425_v13, %v281_v63 }
 0x127   :  { %v286_v4 = vadd.f32 %v587_v1, %v1051_v51  ;;  %v464_v5 = vmax.f32 %v426_v3, 0.0  ;;  %v588_v6 = vpop.f32.mrb[24].mxu0 }
 0x128   :  { %v589_v7 = vpop.f32.mrb[25].mxu0 }
 0x129   :  { %v431_v8 = vadd.f32 %v1058_v10, %v286_v4  ;;  %480 = vst [vmem:[#allocation2 + $0x50] sm:$0xff] %v464_v5  ;;  %v590_v9 = vadd.f32 %v589_v7, %v588_v6 }
 0x12b   :  { %v465_v2 = vmax.f32 %v431_v8, 0.0  ;;  %v591_v11 = vpop.f32.mrb[26].mxu0  ;;  %v291_v12 = vadd.f32 %v590_v9, %v1051_v51 }
 0x12c   :  { %v592_v14 = vpop.f32.mrb[27].mxu0 }
 0x12d   :  { %481 = vst [vmem:[#allocation2 + $0x58] sm:$0xff] %v465_v2  ;;  %v593_v15 = vadd.f32 %v592_v14, %v591_v11  ;;  %v436_v16 = vadd.f32 %v1063_v21, %v291_v12 }
 0x12f   :  { %v296_v13 = vadd.f32 %v593_v15, %v1051_v51  ;;  %v466_v17 = vmax.f32 %v436_v16, 0.0  ;;  %v594_v19 = vpop.f32.mrb[28].mxu0 }
 0x130   :  { %v595_v20 = vpop.f32.mrb[29].mxu0 }
 0x131   :  { %v441_v22 = vadd.f32 %v1061_v18, %v296_v13  ;;  %482 = vst [vmem:[#allocation2 + $0x60] sm:$0xff] %v466_v17  ;;  %v596_v10 = vadd.f32 %v595_v20, %v594_v19 }
 0x133   :  { %v467_v23 = vmax.f32 %v441_v22, 0.0  ;;  %v597_v24 = vpop.f32.mrb[30].mxu0  ;;  %v301_v25 = vadd.f32 %v596_v10, %v1051_v51 }
 0x134   :  { %v598_v27 = vpop.f32.mrb[31].mxu0 }
 0x135   :  { %483 = vst [vmem:[#allocation2 + $0x68] sm:$0xff] %v467_v23  ;;  %v599_v28 = vadd.f32 %v598_v27, %v597_v24  ;;  %v446_v30 = vadd.f32 %v1068_v29, %v301_v25 }
 0x137   :  { %v306_v21 = vadd.f32 %v599_v28, %v1051_v51  ;;  %v468_v31 = vmax.f32 %v446_v30, 0.0 }
 0x139   :  { %v451_v32 = vadd.f32 %v1066_v26, %v306_v21  ;;  %484 = vst [vmem:[#allocation2 + $0x70] sm:$0xff] %v468_v31 }
 0x13b   :  { %v469_v18 = vmax.f32 %v451_v32, 0.0 }
 0x13d   :  { %485 = vst [vmem:[#allocation2 + $0x78] sm:$0xff] %v469_v18 }
 0x13e   :  { %729 = shalt.err (!%p726_p4)
}
 0x13f   :  { %s730_s29 = scalar_lea.hbm %s1102_s3, 2048 }
 0x140   :  { %p731_p5 = scmp.ne.s32.totalorder %s1102_s3, %s730_s29  ;;  %p734_p6 = scmp.lt.u32.totalorder %s730_s29, %s1102_s3 }
 0x142   :  { %p736_p7 = pnand %p734_p6, %p731_p5 }
 0x144   :  { %739 = shalt.err (!%p736_p7)
}
 0x145   :  { %s743_s7 = smov 128   ;;  %s744_s8 = smov 8  }
 0x146   :  { %497 = dma.vmem_to_hbm [thread:$0]  %s492_s2, 2048, %s1102_s3, [#allocation3], %s743_s7, %s743_s7, %s744_s8  }
 0x147   :  { %740 = dma.done.wait [#allocation3], 2048  }
 0x148   :  { %741 = vsyncadd [#allocation3], 4294965248 }
 0x149   :  { %501 = vsyncpa [#allocation3], 1 }

</bundles_post_ra>
